<compile_context>
chip_gen: v5e
topology: v5e:2x2
jax: 0.10.0
libtpu: 0.0.40
codegen_flags: <defaults>
</compile_context>

<pallas_src>
import jax
import jax.numpy as jnp
from jax.experimental import pallas as pl
from jax.experimental.pallas import tpu as pltpu

LATENT = 100                # input feature dim
HIDDEN = 128                # hidden dim
OUT = 784                   # 28*28
K_PAD = 128                 # padded contraction dim (100 -> 128)
OUT_PAD = 896               # lane-dense output width (7 * 128)


def _round_up(x, m):
    return (x + m - 1) // m * m


def generator_kernel(x_ref, w1_ref, b1_ref, w2_ref, b2_ref, o_ref):
    # x_ref:  (TB, 128)  bf16    w1_ref: (128, 128) bf16    b1_ref: (1, 128) f32
    # w2_ref: (128, 896) bf16    b2_ref: (1, 896)  f32      o_ref:  (TB, 896) f32
    h = jnp.dot(x_ref[...], w1_ref[...], preferred_element_type=jnp.float32)
    h = jnp.maximum(h + b1_ref[...], 0.0)                      # bias + ReLU (VPU)
    y = jnp.dot(h.astype(jnp.bfloat16), w2_ref[...],
                preferred_element_type=jnp.float32)
    o_ref[...] = jnp.tanh(y + b2_ref[...])                     # bias + Tanh (EUP)


def generator_forward(x, w1, b1, w2, b2, *, tb=512):
    """x: (B, 100) f32 -> (B, 1, 28, 28) f32.  Same math as the torch module."""
    B = x.shape[0]

    # --- layout plumbing in plain JAX (zero-padding is numerically exact) ---
    TB = min(tb, _round_up(B, 8))          # batch tile, multiple of 8 sublanes
    Bp = _round_up(B, TB)                  # padded batch (handles B % TB != 0)

    x_p = jnp.zeros((Bp, K_PAD), jnp.bfloat16).at[:B, :LATENT].set(
        x.astype(jnp.bfloat16))
    w1_p = jnp.zeros((K_PAD, HIDDEN), jnp.bfloat16).at[:LATENT, :].set(
        w1.astype(jnp.bfloat16))
    b1_p = b1.reshape(1, HIDDEN).astype(jnp.float32)
    w2_p = jnp.zeros((HIDDEN, OUT_PAD), jnp.bfloat16).at[:, :OUT].set(
        w2.astype(jnp.bfloat16))
    b2_p = jnp.zeros((1, OUT_PAD), jnp.float32).at[:, :OUT].set(
        b2.reshape(1, OUT).astype(jnp.float32))

    n_steps = pl.cdiv(Bp, TB)
    cost = pl.CostEstimate(
        flops=2 * Bp * (K_PAD * HIDDEN + HIDDEN * OUT_PAD),
        transcendentals=Bp * OUT_PAD,
        bytes_accessed=(x_p.size * 2 + w1_p.size * 2 + w2_p.size * 2
                        + b1_p.size * 4 + b2_p.size * 4 + Bp * OUT_PAD * 4),
    )

    out_flat = pl.pallas_call(
        generator_kernel,
        out_shape=jax.ShapeDtypeStruct((Bp, OUT_PAD), jnp.float32),
        grid=(n_steps,),
        in_specs=[
            pl.BlockSpec((TB, K_PAD), lambda i: (i, 0)),       # x: batch-tiled
            pl.BlockSpec((K_PAD, HIDDEN), lambda i: (0, 0)),   # weights resident
            pl.BlockSpec((1, HIDDEN), lambda i: (0, 0)),
            pl.BlockSpec((HIDDEN, OUT_PAD), lambda i: (0, 0)),
            pl.BlockSpec((1, OUT_PAD), lambda i: (0, 0)),
        ],
        out_specs=pl.BlockSpec((TB, OUT_PAD), lambda i: (i, 0)),
        compiler_params=pltpu.CompilerParams(
            dimension_semantics=("parallel",),   # 2-TC sharding on v7x; neutral elsewhere
        ),
        cost_estimate=cost,
    )(x_p, w1_p, b1_p, w2_p, b2_p)

    # Drop batch / lane padding, then same semantics as torch's view(-1, 1, 28, 28).
    return out_flat[:B, :OUT].reshape(-1, 1, 28, 28)


def init_params(key):
    """Deterministic init mimicking nn.Linear's U(-1/sqrt(fan_in), 1/sqrt(fan_in))."""
    k1, k2, k3, k4 = jax.random.split(key, 4)
    lim1 = 1.0 / jnp.sqrt(100.0)
    lim2 = 1.0 / jnp.sqrt(128.0)
    w1 = jax.random.uniform(k1, (LATENT, HIDDEN), jnp.float32, -lim1, lim1)
    b1 = jax.random.uniform(k2, (1, HIDDEN), jnp.float32, -lim1, lim1)
    w2 = jax.random.uniform(k3, (HIDDEN, OUT), jnp.float32, -lim2, lim2)
    b2 = jax.random.uniform(k4, (1, OUT), jnp.float32, -lim2, lim2)
    return w1, b1, w2, b2


if __name__ == "__main__":
    key = jax.random.PRNGKey(0)
    k_x, k_p = jax.random.split(key)

    batch = 8
    x = jax.random.normal(k_x, (batch, LATENT), jnp.float32)  # latent noise
    w1, b1, w2, b2 = init_params(k_p)

    out = jax.block_until_ready(generator_forward(x, w1, b1, w2, b2))
    assert out.shape == (batch, 1, 28, 28), out.shape

    # Reference in the same precision (bf16 MXU inputs, f32 accumulation).
    h_ref = jnp.maximum(
        jnp.dot(x.astype(jnp.bfloat16), w1.astype(jnp.bfloat16),
                preferred_element_type=jnp.float32) + b1, 0.0)
    ref = jnp.tanh(
        jnp.dot(h_ref.astype(jnp.bfloat16), w2.astype(jnp.bfloat16),
                preferred_element_type=jnp.float32) + b2).reshape(-1, 1, 28, 28)
    assert jnp.allclose(out, ref, atol=1e-3, rtol=1e-3), float(
        jnp.max(jnp.abs(out - ref)))

    # Loose sanity check against the pure-f32 math (tanh output is in [-1, 1]).
    ref_f32 = jnp.tanh(jnp.maximum(x @ w1 + b1, 0.0) @ w2 + b2).reshape(-1, 1, 28, 28)
    assert jnp.allclose(out, ref_f32, atol=5e-2), float(
        jnp.max(jnp.abs(out - ref_f32)))

    print("KERNEL_OK")
</pallas_src>

<mosaic_0001>
module attributes {stable_mosaic.version = 11 : i64} {
  func.func @generator_kernel(%arg0: i32, %arg1: memref<8x128xbf16, #tpu.memory_space<vmem>>, %arg2: memref<128x128xbf16, #tpu.memory_space<vmem>>, %arg3: memref<1x128xf32, #tpu.memory_space<vmem>>, %arg4: memref<128x896xbf16, #tpu.memory_space<vmem>>, %arg5: memref<1x896xf32, #tpu.memory_space<vmem>>, %arg6: memref<8x896xf32, #tpu.memory_space<vmem>>) attributes {dimension_semantics = [#tpu.dimension_semantics<parallel>], iteration_bounds = array<i64: 1>, scalar_prefetch = 0 : i64, scratch_operands = 0 : i64, tpu.core_type = #tpu.core_type<tc>, window_params = [{transform_indices = @transform_0, window_bounds = array<i64: 8, 128>}, {pipeline_mode = #tpu.pipeline_mode<synchronous>, transform_indices = @transform_1, window_bounds = array<i64: 128, 128>}, {pipeline_mode = #tpu.pipeline_mode<synchronous>, transform_indices = @transform_2, window_bounds = array<i64: 1, 128>}, {pipeline_mode = #tpu.pipeline_mode<synchronous>, transform_indices = @transform_3, window_bounds = array<i64: 128, 896>}, {pipeline_mode = #tpu.pipeline_mode<synchronous>, transform_indices = @transform_4, window_bounds = array<i64: 1, 896>}, {transform_indices = @transform_5, window_bounds = array<i64: 8, 896>}]} {
    %c0 = arith.constant 0 : index
    %c0_0 = arith.constant 0 : index
    %0 = vector.load %arg1[%c0, %c0_0] : memref<8x128xbf16, #tpu.memory_space<vmem>>, vector<8x128xbf16>
    %c0_1 = arith.constant 0 : index
    %c0_2 = arith.constant 0 : index
    %1 = vector.load %arg2[%c0_1, %c0_2] : memref<128x128xbf16, #tpu.memory_space<vmem>>, vector<128x128xbf16>
    %cst = arith.constant dense<0.000000e+00> : vector<8x128xf32>
    %2 = tpu.matmul %0, %1, %cst {dimension_numbers = #tpu.dot_dimension_numbers<[1], [0], [0], [1], [0, 0, 1, 1], [], []>} : vector<8x128xbf16>, vector<128x128xbf16>, vector<8x128xf32> -> vector<8x128xf32>
    %c0_3 = arith.constant 0 : index
    %c0_4 = arith.constant 0 : index
    %3 = vector.load %arg3[%c0_3, %c0_4] : memref<1x128xf32, #tpu.memory_space<vmem>>, vector<1x128xf32>
    %4 = vector.broadcast %3 : vector<1x128xf32> to vector<8x128xf32>
    %5 = arith.addf %2, %4 : vector<8x128xf32>
    %cst_5 = arith.constant 0.000000e+00 : f32
    %6 = vector.broadcast %cst_5 : f32 to vector<8x128xf32>
    %7 = arith.maximumf %5, %6 : vector<8x128xf32>
    %8 = arith.truncf %7 : vector<8x128xf32> to vector<8x128xbf16>
    %c0_6 = arith.constant 0 : index
    %c0_7 = arith.constant 0 : index
    %9 = vector.load %arg4[%c0_6, %c0_7] : memref<128x896xbf16, #tpu.memory_space<vmem>>, vector<128x896xbf16>
    %cst_8 = arith.constant dense<0.000000e+00> : vector<8x896xf32>
    %10 = tpu.matmul %8, %9, %cst_8 {dimension_numbers = #tpu.dot_dimension_numbers<[1], [0], [0], [1], [0, 0, 1, 1], [], []>} : vector<8x128xbf16>, vector<128x896xbf16>, vector<8x896xf32> -> vector<8x896xf32>
    %c0_9 = arith.constant 0 : index
    %c0_10 = arith.constant 0 : index
    %11 = vector.load %arg5[%c0_9, %c0_10] : memref<1x896xf32, #tpu.memory_space<vmem>>, vector<1x896xf32>
    %12 = vector.broadcast %11 : vector<1x896xf32> to vector<8x896xf32>
    %13 = arith.addf %10, %12 : vector<8x896xf32>
    %14 = math.tanh %13 : vector<8x896xf32>
    %c0_11 = arith.constant 0 : index
    %c0_12 = arith.constant 0 : index
    %15 = vector.load %arg6[%c0_11, %c0_12] : memref<8x896xf32, #tpu.memory_space<vmem>>, vector<8x896xf32>
    tpu.vector_store %arg6[%c0_11, %c0_12], %14 {strides = array<i32>} : memref<8x896xf32, #tpu.memory_space<vmem>>, vector<8x896xf32>,
    return
  }
  func.func @transform_0(%arg0: i32) -> (i32, i32) {
    %c0_i32 = arith.constant 0 : i32
    %c0_i32_0 = arith.constant 0 : i32
    return %arg0, %c0_i32 : i32, i32
  }
  func.func @transform_1(%arg0: i32) -> (i32, i32) {
    %c0_i32 = arith.constant 0 : i32
    %c0_i32_0 = arith.constant 0 : i32
    %c0_i32_1 = arith.constant 0 : i32
    return %c0_i32, %c0_i32_0 : i32, i32
  }
  func.func @transform_2(%arg0: i32) -> (i32, i32) {
    %c0_i32 = arith.constant 0 : i32
    %c0_i32_0 = arith.constant 0 : i32
    %c0_i32_1 = arith.constant 0 : i32
    return %c0_i32, %c0_i32_0 : i32, i32
  }
  func.func @transform_3(%arg0: i32) -> (i32, i32) {
    %c0_i32 = arith.constant 0 : i32
    %c0_i32_0 = arith.constant 0 : i32
    %c0_i32_1 = arith.constant 0 : i32
    return %c0_i32, %c0_i32_0 : i32, i32
  }
  func.func @transform_4(%arg0: i32) -> (i32, i32) {
    %c0_i32 = arith.constant 0 : i32
    %c0_i32_0 = arith.constant 0 : i32
    %c0_i32_1 = arith.constant 0 : i32
    return %c0_i32, %c0_i32_0 : i32, i32
  }
  func.func @transform_5(%arg0: i32) -> (i32, i32) {
    %c0_i32 = arith.constant 0 : i32
    %c0_i32_0 = arith.constant 0 : i32
    return %arg0, %c0_i32 : i32, i32
  }
}

</mosaic_0001>

<bundles_post_ra>
// kernel: tpu_custom_call.1
= control target key start
LH: loop header
LB: loop body
LE: loop exit
PB: predicated region body
PF: predicated region fallthrough
CT: control target
= control target key end

     0   :  { %10 = vsyncpa [#allocation3], 0  ;;  %s1185_s0 = inlined_call_operand.hbm [shape: bf16[8,128], index: 0, kind: input, shape index: {}]   ;;  %s1186_s1 = inlined_call_operand.hbm [shape: bf16[128,128], index: 1, kind: input, shape index: {}]   ;;  %s1187_s2 = inlined_call_operand.vmem [shape: f32[1,128], index: 2, kind: input, shape index: {}]   ;;  %s1188_s3 = inlined_call_operand.hbm [shape: bf16[128,896], index: 3, kind: input, shape index: {}]   ;;  %s1189_s4 = inlined_call_operand.hbm [shape: f32[1,896], index: 4, kind: input, shape index: {}]   ;;  %s1190_s5 = inlined_call_operand.hbm [shape: f32[8,896], index: 5, kind: output, shape index: {}]  }
   0x1   :  { %11 = vsyncpa [#allocation6], 0 }
   0x2   :  { %12 = vsyncpa [#allocation9], 0  ;;  %s29_s20 = sshll.u32 %s1186_s1, 4  ;;  %s30_s20 = int_to_ptr.hbm [resolvable:$true] %s29_s20 }
   0x3   :  { %13 = vsyncpa [#allocation4], 0  ;;  %s1128_s21 = smov [#allocation5]   ;;  %s19_s25 = sshll.u32 %s1185_s0, 4  ;;  %s20_s25 = int_to_ptr.hbm [resolvable:$true] %s19_s25 }
   0x4   :  { %s31_s22 = sshll.u32 %s1128_s21, 4  ;;  %s1129_s26 = smov 64   ;;  %s32_s22 = int_to_ptr.vmem [resolvable:$true] %s31_s22 }
   0x5   :  { %s1130_s27 = smov 4   ;;  %s1131_s28 = smov [#allocation2]  }
   0x6   :  { %37 = dma.hbm_to_vmem [thread:$0]  %s30_s20, 1024, %s32_s22, [#allocation6], %s1129_s26, %s1129_s26, %s1130_s27  }
   0x7   :  { %s21_s29 = sshll.u32 %s1131_s28, 4  ;;  %s44_s7 = sshll.u32 %s1188_s3, 4  ;;  %s22_s29 = int_to_ptr.vmem [resolvable:$true] %s21_s29  ;;  %s45_s7 = int_to_ptr.hbm [resolvable:$true] %s44_s7 }
   0x8   :  { %24 = dma.hbm_to_vmem [thread:$0]  %s20_s25, 64, %s22_s29, [#allocation3]  }
   0x9   :  { %s1132_s1 = smov [#allocation7]   ;;  %s58_s0 = sshll.u32 %s1189_s4, 4  ;;  %s59_s0 = int_to_ptr.hbm [resolvable:$true] %s58_s0 }
   0xa   :  { %s46_s8 = sshll.u32 %s1132_s1, 4  ;;  %s1133_s11 = smov 448   ;;  %s47_s8 = int_to_ptr.vmem [resolvable:$true] %s46_s8 }
   0xb   :  { %s1134_s12 = smov 28   ;;  %s1135_s13 = smov [#allocation8]  }
   0xc   :  { %52 = dma.hbm_to_vmem [thread:$0]  %s45_s7, 7168, %s47_s8, [#allocation6], %s1133_s11, %s1133_s11, %s1134_s12  }
   0xd   :  { %s60_s14 = sshll.u32 %s1135_s13, 4  ;;  %s61_s14 = int_to_ptr.vmem [resolvable:$true] %s60_s14 }
   0xe   :  { %63 = dma.hbm_to_vmem [thread:$0]  %s59_s0, 112, %s61_s14, [#allocation9]  }
   0xf   :  { %1120 = dma.done.wait [#allocation3], 64  }
  0x10   :  { %1121 = vsyncadd [#allocation3], 4294967232 }
  0x11   :  { %1122 = dma.done.wait [#allocation6], 8192  }
  0x12   :  { %1123 = vsyncadd [#allocation6], 4294959104 }
  0x13   :  { %1124 = dma.done.wait [#allocation9], 112  }
  0x14   :  { %1125 = vsyncadd [#allocation9], 4294967184  ;;  %v919_v0 = vld [vmem:[#allocation5 + $0x38] sm:$0xff]  ;;  %v918_v1 = vld [vmem:[#allocation5 + $0x30] sm:$0xff]  ;;  %s644_s18 = sshll.u32 %s1190_s5, 4  ;;  %s645_s18 = int_to_ptr.hbm [resolvable:$true] %s644_s18 }
  0x15   :  { %149 = vmatpush.bf16.msra.mxu0 %v919_v0  ;;  %v886_v2 = vld [vmem:[#allocation7 + $0x188] sm:$0xf]  ;;  %v972_v3 = vld [vmem:[#allocation7 + $0x1a0] sm:$0xf0]  ;;  %v969_v4 = vld [vmem:[#allocation7 + $0x18c] sm:$0xf] }
  0x16   :  { %v917_v5 = vld [vmem:[#allocation5 + $0x28] sm:$0xff]  ;;  %v887_v6 = vor.u32 %v972_v3, %v886_v2  ;;  %v894_v8 = vld [vmem:[#allocation7 + $0x190] sm:$0xf]  ;;  %v962_v14 = vld [vmem:[#allocation7 + $0x154] sm:$0xf] }
  0x17   :  { %v888_v7 = vld [vmem:[#allocation7 + $0x1a4] sm:$0xf0]  ;;  %v973_v9 = vld [vmem:[#allocation7 + $0x1a8] sm:$0xf0]  ;;  %v858_v12 = vld [vmem:[#allocation7 + $0x150] sm:$0xf] }
  0x18   :  { %v891_v10 = vor.u32 %v969_v4, %v888_v7  ;;  %v895_v11 = vor.u32 %v973_v9, %v894_v8  ;;  %v965_v13 = vld [vmem:[#allocation7 + $0x168] sm:$0xf0]  ;;  %532 = vmatpush.bf16.msra.mxu1 %v887_v6  ;;  %v860_v16 = vld [vmem:[#allocation7 + $0x16c] sm:$0xf0]  ;;  %v866_v17 = vld [vmem:[#allocation7 + $0x158] sm:$0xf] }
  0x19   :  { %150 = vmatpush.bf16.msra.mxu0 %v918_v1  ;;  %v859_v15 = vor.u32 %v965_v13, %v858_v12  ;;  %v966_v18 = vld [vmem:[#allocation7 + $0x170] sm:$0xf0]  ;;  %v863_v19 = vor.u32 %v962_v14, %v860_v16  ;;  %v830_v21 = vld [vmem:[#allocation7 + $0x118] sm:$0xf]  ;;  %v955_v23 = vld [vmem:[#allocation7 + $0x11c] sm:$0xf] }
  0x1a   :  { %545 = vmatpush.bf16.msra.mxu2 %v891_v10  ;;  %558 = vmatpush.bf16.msra.mxu3 %v895_v11  ;;  %v867_v20 = vor.u32 %v966_v18, %v866_v17  ;;  %v958_v22 = vld [vmem:[#allocation7 + $0x130] sm:$0xf0]  ;;  %v832_v24 = vld [vmem:[#allocation7 + $0x134] sm:$0xf0]  ;;  %v838_v25 = vld [vmem:[#allocation7 + $0x120] sm:$0xf] }
  0x1b   :  { %v959_v26 = vld [vmem:[#allocation7 + $0x138] sm:$0xf0]  ;;  %v916_v27 = vld [vmem:[#allocation5 + $0x20] sm:$0xff]  ;;  %v831_v28 = vor.u32 %v958_v22, %v830_v21  ;;  %v835_v29 = vor.u32 %v955_v23, %v832_v24  ;;  %v810_v35 = vld [vmem:[#allocation7 + $0xe8] sm:$0xf] }
  0x1c   :  { %533 = vmatpush.bf16.msra.mxu1 %v859_v15  ;;  %v839_v30 = vor.u32 %v959_v26, %v838_v25  ;;  %v802_v31 = vld [vmem:[#allocation7 + $0xe0] sm:$0xf]  ;;  %v951_v32 = vld [vmem:[#allocation7 + $0xf8] sm:$0xf0]  ;;  %v948_v33 = vld [vmem:[#allocation7 + $0xe4] sm:$0xf] }
  0x1d   :  { %151 = vmatpush.bf16.msra.mxu0 %v917_v5  ;;  %v804_v34 = vld [vmem:[#allocation7 + $0xfc] sm:$0xf0]  ;;  %v952_v36 = vld [vmem:[#allocation7 + $0x100] sm:$0xf0]  ;;  %v915_v37 = vld [vmem:[#allocation5 + $0x18] sm:$0xff]  ;;  %v803_v38 = vor.u32 %v951_v32, %v802_v31 }
  0x1e   :  { %546 = vmatpush.bf16.msra.mxu2 %v863_v19  ;;  %559 = vmatpush.bf16.msra.mxu3 %v867_v20  ;;  %v807_v39 = vor.u32 %v948_v33, %v804_v34  ;;  %v811_v40 = vor.u32 %v952_v36, %v810_v35  ;;  %v774_v41 = vld [vmem:[#allocation7 + $0xa8] sm:$0xf]  ;;  %v944_v42 = vld [vmem:[#allocation7 + $0xc0] sm:$0xf0]  ;;  %v941_v43 = vld [vmem:[#allocation7 + $0xac] sm:$0xf] }
  0x1f   :  { %v776_v44 = vld [vmem:[#allocation7 + $0xc4] sm:$0xf0]  ;;  %v782_v45 = vld [vmem:[#allocation7 + $0xb0] sm:$0xf]  ;;  %v945_v46 = vld [vmem:[#allocation7 + $0xc8] sm:$0xf0]  ;;  %v775_v48 = vor.u32 %v944_v42, %v774_v41 }
  0x20   :  { %534 = vmatpush.bf16.msra.mxu1 %v831_v28  ;;  %v914_v47 = vld [vmem:[#allocation5 + $0x10] sm:$0xff]  ;;  %v779_v49 = vor.u32 %v941_v43, %v776_v44  ;;  %v783_v50 = vor.u32 %v945_v46, %v782_v45  ;;  %v937_v52 = vld [vmem:[#allocation7 + $0x88] sm:$0xf0]  ;;  %v754_v55 = vld [vmem:[#allocation7 + $0x78] sm:$0xf] }
  0x21   :  { %152 = vmatpush.bf16.msra.mxu0 %v916_v27  ;;  %v746_v51 = vld [vmem:[#allocation7 + $0x70] sm:$0xf]  ;;  %v934_v53 = vld [vmem:[#allocation7 + $0x74] sm:$0xf]  ;;  %v913_v57 = vld [vmem:[#allocation5 + $0x8] sm:$0xff] }
  0x22   :  { %547 = vmatpush.bf16.msra.mxu2 %v835_v29  ;;  %560 = vmatpush.bf16.msra.mxu3 %v839_v30  ;;  %v748_v54 = vld [vmem:[#allocation7 + $0x8c] sm:$0xf0]  ;;  %v938_v56 = vld [vmem:[#allocation7 + $0x90] sm:$0xf0]  ;;  %v747_v58 = vor.u32 %v937_v52, %v746_v51  ;;  %v718_v62 = vld [vmem:[#allocation7 + $0x38] sm:$0xf] }
  0x23   :  { %v970_v59 = vld [vmem:[#allocation7 + $0x194] sm:$0xf]  ;;  %v751_v60 = vor.u32 %v934_v53, %v748_v54  ;;  %v755_v61 = vor.u32 %v938_v56, %v754_v55  ;;  %v896_v0 = vld [vmem:[#allocation7 + $0x1ac] sm:$0xf0]  ;;  %v927_v1 = vld [vmem:[#allocation7 + $0x3c] sm:$0xf] }
  0x24   :  { %535 = vmatpush.bf16.msra.mxu1 %v803_v38  ;;  %v930_v63 = vld [vmem:[#allocation7 + $0x50] sm:$0xf0]  ;;  %v720_v2 = vld [vmem:[#allocation7 + $0x54] sm:$0xf0]  ;;  %v912_v3 = vld [vmem:[#allocation5] sm:$0xff]  ;;  %v899_v10 = vor.u32 %v970_v59, %v896_v0 }
  0x25   :  { %153 = vmatpush.bf16.msra.mxu0 %v915_v37  ;;  %v726_v4 = vld [vmem:[#allocation7 + $0x40] sm:$0xf]  ;;  %v931_v5 = vld [vmem:[#allocation7 + $0x58] sm:$0xf0]  ;;  %v868_v7 = vld [vmem:[#allocation7 + $0x174] sm:$0xf0]  ;;  %v719_v8 = vor.u32 %v930_v63, %v718_v62  ;;  %v723_v11 = vor.u32 %v927_v1, %v720_v2 }
  0x26   :  { %548 = vmatpush.bf16.msra.mxu2 %v807_v39  ;;  %561 = vmatpush.bf16.msra.mxu3 %v811_v40  ;;  %v963_v6 = vld [vmem:[#allocation7 + $0x15c] sm:$0xf]  ;;  %v690_v9 = vld [vmem:[#allocation7] sm:$0xf]  ;;  %v920_v13 = vld [vmem:[#allocation7 + $0x4] sm:$0xf]  ;;  %v727_v15 = vor.u32 %v931_v5, %v726_v4 }
  0x27   :  { %v923_v12 = vld [vmem:[#allocation7 + $0x18] sm:$0xf0]  ;;  %v692_v16 = vld [vmem:[#allocation7 + $0x1c] sm:$0xf0]  ;;  %v698_v17 = vld [vmem:[#allocation7 + $0x8] sm:$0xf]  ;;  %v871_v26 = vor.u32 %v963_v6, %v868_v7 }
  0x28   :  { %536 = vmatpush.bf16.msra.mxu1 %v775_v48  ;;  %v80_v14 = vld [vmem:[#allocation2] sm:$0xf]  ;;  %v924_v18 = vld [vmem:[#allocation7 + $0x20] sm:$0xf0]  ;;  %v902_v19 = vld [vmem:[#allocation7 + $0x198] sm:$0xf]  ;;  %v691_v22 = vor.u32 %v923_v12, %v690_v9  ;;  %v695_v27 = vor.u32 %v920_v13, %v692_v16 }
  0x29   :  { %154 = vmatpush.bf16.msra.mxu0 %v914_v47  ;;  %v974_v20 = vld [vmem:[#allocation7 + $0x1b0] sm:$0xf0]  ;;  %v971_v21 = vld [vmem:[#allocation7 + $0x19c] sm:$0xf]  ;;  %v904_v23 = vld [vmem:[#allocation7 + $0x1b4] sm:$0xf0]  ;;  %v699_v30 = vor.u32 %v924_v18, %v698_v17 }
  0x2a   :  { %549 = vmatpush.bf16.msra.mxu2 %v779_v49  ;;  %562 = vmatpush.bf16.msra.mxu3 %v783_v50  ;;  %v910_v24 = vld [vmem:[#allocation7 + $0x1a0] sm:$0xf]  ;;  %v975_v25 = vld [vmem:[#allocation7 + $0x1b8] sm:$0xf0]  ;;  %v956_v28 = vld [vmem:[#allocation7 + $0x124] sm:$0xf]  ;;  %v903_v31 = vor.u32 %v974_v20, %v902_v19  ;;  %v907_v32 = vor.u32 %v971_v21, %v904_v23 }
  0x2b   :  { %v840_v29 = vld [vmem:[#allocation7 + $0x13c] sm:$0xf0]  ;;  %v911_v33 = vor.u32 %v975_v25, %v910_v24  ;;  %v967_v35 = vld [vmem:[#allocation7 + $0x178] sm:$0xf0]  ;;  %v964_v36 = vld [vmem:[#allocation7 + $0x164] sm:$0xf] }
  0x2c   :  { %537 = vmatpush.bf16.msra.mxu1 %v747_v58  ;;  %v874_v34 = vld [vmem:[#allocation7 + $0x160] sm:$0xf]  ;;  %v882_v38 = vld [vmem:[#allocation7 + $0x168] sm:$0xf]  ;;  %v968_v39 = vld [vmem:[#allocation7 + $0x180] sm:$0xf0]  ;;  %v843_v40 = vor.u32 %v956_v28, %v840_v29 }
  0x2d   :  { %155 = vmatpush.bf16.msra.mxu0 %v913_v57  ;;  %v876_v37 = vld [vmem:[#allocation7 + $0x17c] sm:$0xf0]  ;;  %v949_v41 = vld [vmem:[#allocation7 + $0xec] sm:$0xf]  ;;  %v812_v42 = vld [vmem:[#allocation7 + $0x104] sm:$0xf0]  ;;  %v875_v43 = vor.u32 %v967_v35, %v874_v34  ;;  %v883_v45 = vor.u32 %v968_v39, %v882_v38 }
  0x2e   :  { %550 = vmatpush.bf16.msra.mxu2 %v751_v60  ;;  %563 = vmatpush.bf16.msra.mxu3 %v755_v61  ;;  %v879_v44 = vor.u32 %v964_v36, %v876_v37  ;;  %v815_v46 = vor.u32 %v949_v41, %v812_v42  ;;  %v942_v47 = vld [vmem:[#allocation7 + $0xb4] sm:$0xf]  ;;  %v784_v48 = vld [vmem:[#allocation7 + $0xcc] sm:$0xf0]  ;;  %v935_v50 = vld [vmem:[#allocation7 + $0x7c] sm:$0xf] }
  0x2f   :  { %v787_v49 = vor.u32 %v942_v47, %v784_v48  ;;  %v756_v51 = vld [vmem:[#allocation7 + $0x94] sm:$0xf0]  ;;  %v928_v53 = vld [vmem:[#allocation7 + $0x44] sm:$0xf]  ;;  %v728_v54 = vld [vmem:[#allocation7 + $0x5c] sm:$0xf0] }
  0x30   :  { %538 = vmatpush.bf16.msra.mxu1 %v719_v8  ;;  %v759_v52 = vor.u32 %v935_v50, %v756_v51  ;;  %v846_v55 = vld [vmem:[#allocation7 + $0x128] sm:$0xf]  ;;  %v731_v56 = vor.u32 %v928_v53, %v728_v54  ;;  %v960_v57 = vld [vmem:[#allocation7 + $0x140] sm:$0xf0]  ;;  %v957_v58 = vld [vmem:[#allocation7 + $0x12c] sm:$0xf] }
  0x31   :  { %156 = vmatpush.bf16.msra.mxu0 %v912_v3  ;;  %v848_v59 = vld [vmem:[#allocation7 + $0x144] sm:$0xf0]  ;;  %v847_v60 = vor.u32 %v960_v57, %v846_v55  ;;  %v854_v62 = vld [vmem:[#allocation7 + $0x130] sm:$0xf]  ;;  %v961_v63 = vld [vmem:[#allocation7 + $0x148] sm:$0xf0] }
  0x32   :  { %551 = vmatpush.bf16.msra.mxu2 %v723_v11  ;;  %564 = vmatpush.bf16.msra.mxu3 %v727_v15  ;;  %v851_v61 = vor.u32 %v957_v58, %v848_v59  ;;  %v855_v0 = vor.u32 %v961_v63, %v854_v62  ;;  %v921_v1 = vld [vmem:[#allocation7 + $0xc] sm:$0xf]  ;;  %v700_v2 = vld [vmem:[#allocation7 + $0x24] sm:$0xf0]  ;;  %v818_v3 = vld [vmem:[#allocation7 + $0xf0] sm:$0xf] }
  0x33   :  { %v703_v4 = vor.u32 %v921_v1, %v700_v2  ;;  %v953_v5 = vld [vmem:[#allocation7 + $0x108] sm:$0xf0]  ;;  %v950_v6 = vld [vmem:[#allocation7 + $0xf4] sm:$0xf]  ;;  %v820_v7 = vld [vmem:[#allocation7 + $0x10c] sm:$0xf0] }
  0x34   :  { %157 = vmatmul.bf16.vlgmr.msra.gmra.mxu0 %v80_v14  ;;  %539 = vmatpush.bf16.msra.mxu1 %v691_v22  ;;  %v819_v8 = vor.u32 %v953_v5, %v818_v3  ;;  %v823_v9 = vor.u32 %v950_v6, %v820_v7  ;;  %v954_v11 = vld [vmem:[#allocation7 + $0x110] sm:$0xf0]  ;;  %v790_v13 = vld [vmem:[#allocation7 + $0xb8] sm:$0xf]  ;;  %v943_v15 = vld [vmem:[#allocation7 + $0xbc] sm:$0xf] }
  0x35   :  { %571 = vmatpush.bf16.msrb.mxu0 %v899_v10  ;;  %v826_v10 = vld [vmem:[#allocation7 + $0xf8] sm:$0xf]  ;;  %v946_v14 = vld [vmem:[#allocation7 + $0xd0] sm:$0xf0]  ;;  %v798_v18 = vld [vmem:[#allocation7 + $0xc0] sm:$0xf] }
  0x36   :  { %552 = vmatpush.bf16.msra.mxu2 %v695_v27  ;;  %565 = vmatpush.bf16.msra.mxu3 %v699_v30  ;;  %v827_v12 = vor.u32 %v954_v11, %v826_v10  ;;  %v791_v16 = vor.u32 %v946_v14, %v790_v13  ;;  %v792_v17 = vld [vmem:[#allocation7 + $0xd4] sm:$0xf0]  ;;  %v947_v19 = vld [vmem:[#allocation7 + $0xd8] sm:$0xf0]  ;;  %v762_v22 = vld [vmem:[#allocation7 + $0x80] sm:$0xf] }
  0x37   :  { %v795_v20 = vor.u32 %v943_v15, %v792_v17  ;;  %v799_v21 = vor.u32 %v947_v19, %v798_v18  ;;  %v939_v23 = vld [vmem:[#allocation7 + $0x98] sm:$0xf0]  ;;  %v936_v24 = vld [vmem:[#allocation7 + $0x84] sm:$0xf]  ;;  %v770_v27 = vld [vmem:[#allocation7 + $0x88] sm:$0xf] }
  0x38   :  { %584 = vmatpush.bf16.msrb.mxu1 %v903_v31  ;;  %v763_v25 = vor.u32 %v939_v23, %v762_v22  ;;  %v940_v28 = vld [vmem:[#allocation7 + $0xa0] sm:$0xf0]  ;;  %v734_v31 = vld [vmem:[#allocation7 + $0x48] sm:$0xf]  ;;  %v742_v35 = vld [vmem:[#allocation7 + $0x50] sm:$0xf] }
  0x39   :  { %572 = vmatpush.bf16.msrb.mxu0 %v871_v26  ;;  %v764_v26 = vld [vmem:[#allocation7 + $0x9c] sm:$0xf0]  ;;  %v771_v30 = vor.u32 %v940_v28, %v770_v27  ;;  %v736_v34 = vld [vmem:[#allocation7 + $0x64] sm:$0xf0]  ;;  %v933_v36 = vld [vmem:[#allocation7 + $0x68] sm:$0xf0] }
  0x3a   :  { %597 = vmatpush.bf16.msrb.mxu2 %v907_v32  ;;  %610 = vmatpush.bf16.msrb.mxu3 %v911_v33  ;;  %v767_v29 = vor.u32 %v936_v24, %v764_v26  ;;  %v932_v32 = vld [vmem:[#allocation7 + $0x60] sm:$0xf0]  ;;  %v929_v33 = vld [vmem:[#allocation7 + $0x4c] sm:$0xf]  ;;  %v743_v39 = vor.u32 %v933_v36, %v742_v35  ;;  %v922_v42 = vld [vmem:[#allocation7 + $0x14] sm:$0xf] }
  0x3b   :  { %v735_v37 = vor.u32 %v932_v32, %v734_v31  ;;  %v739_v38 = vor.u32 %v929_v33, %v736_v34  ;;  %v925_v41 = vld [vmem:[#allocation7 + $0x28] sm:$0xf0]  ;;  %v228_v55 = vld [vmem:[#allocation8] sm:$0xff] }
  0x3c   :  { %585 = vmatpush.bf16.msrb.mxu1 %v875_v43  ;;  %v708_v43 = vld [vmem:[#allocation7 + $0x2c] sm:$0xf0]  ;;  %v233_v57 = vperm.slane %v228_v55, 3  ;;  %v231_v62 = vperm.slane %v228_v55, 1  ;;  %v232_v63 = vperm.slane %v228_v55, 2  ;;  %v235_v15 = vperm.slane %v228_v55, 5 }
  0x3d   :  { %573 = vmatpush.bf16.msrb.mxu0 %v843_v40  ;;  %v706_v40 = vld [vmem:[#allocation7 + $0x10] sm:$0xf]  ;;  %v711_v47 = vor.u32 %v922_v42, %v708_v43 }
  0x3e   :  { %598 = vmatpush.bf16.msrb.mxu2 %v879_v44  ;;  %611 = vmatpush.bf16.msrb.mxu3 %v883_v45  ;;  %v714_v44 = vld [vmem:[#allocation7 + $0x18] sm:$0xf]  ;;  %v926_v45 = vld [vmem:[#allocation7 + $0x30] sm:$0xf0] }
  0x3f   :  { %v715_v48 = vor.u32 %v926_v45, %v714_v44 }
  0x40   :  { %586 = vmatpush.bf16.msrb.mxu1 %v847_v60 }
  0x41   :  { %574 = vmatpush.bf16.msrb.mxu0 %v815_v46  ;;  %v707_v46 = vor.u32 %v925_v41, %v706_v40 }
  0x42   :  { %599 = vmatpush.bf16.msrb.mxu2 %v851_v61  ;;  %612 = vmatpush.bf16.msrb.mxu3 %v855_v0 }
  0x44   :  { %587 = vmatpush.bf16.msrb.mxu1 %v819_v8  ;;  %v234_v8 = vperm.slane %v228_v55, 4 }
  0x45   :  { %575 = vmatpush.bf16.msrb.mxu0 %v787_v49  ;;  %v985_v49 = vld [vmem:[%s1187_s2] ss:$0 sm:$0xff]  ;;  %s1136_s2 = smov [#allocation10]  }
  0x46   :  { %600 = vmatpush.bf16.msrb.mxu2 %v823_v9  ;;  %613 = vmatpush.bf16.msrb.mxu3 %v827_v12  ;;  %s642_s15 = sshll.u32 %s1136_s2, 4  ;;  %s643_s15 = int_to_ptr.vmem [resolvable:$true] %s642_s15 }
  0x48   :  { %588 = vmatpush.bf16.msrb.mxu1 %v791_v16  ;;  %v236_v16 = vperm.slane %v228_v55, 6 }
  0x49   :  { %576 = vmatpush.bf16.msrb.mxu0 %v759_v52 }
  0x4a   :  { %601 = vmatpush.bf16.msrb.mxu2 %v795_v20  ;;  %614 = vmatpush.bf16.msrb.mxu3 %v799_v21 }
  0x4c   :  { %589 = vmatpush.bf16.msrb.mxu1 %v763_v25 }
  0x4d   :  { %577 = vmatpush.bf16.msrb.mxu0 %v731_v56  ;;  %v230_v56 = vperm.slane %v228_v55, 0 }
  0x4e   :  { %602 = vmatpush.bf16.msrb.mxu2 %v767_v29  ;;  %615 = vmatpush.bf16.msrb.mxu3 %v771_v30 }
  0x50   :  { %590 = vmatpush.bf16.msrb.mxu1 %v735_v37 }
  0x51   :  { %578 = vmatpush.bf16.msrb.mxu0 %v703_v4 }
  0x52   :  { %603 = vmatpush.bf16.msrb.mxu2 %v739_v38  ;;  %616 = vmatpush.bf16.msrb.mxu3 %v743_v39 }
  0x54   :  { %591 = vmatpush.bf16.msrb.mxu1 %v707_v46 }
  0x56   :  { %604 = vmatpush.bf16.msrb.mxu2 %v711_v47  ;;  %617 = vmatpush.bf16.msrb.mxu3 %v715_v48 }
  0xb1   :  { %v158_v50 = vpop.f32.mrf.mxu0 }
  0xb2   :  { %v159_v51 = vadd.f32 %v985_v49, %v158_v50 }
  0xb4   :  { %v162_v52 = vmax.f32 %v159_v51, 0.0 }
  0xb6   :  { %v163_v53 = vpack.c.bf16 %v162_v52, %v162_v52 }
  0xb8   :  { %540 = vmatmul.bf16.vlgmr.msra.gmra.mxu1 %v163_v53  ;;  %553 = vmatmul.bf16.vlgmr.msra.gmra.mxu2 %v163_v53 }
  0xb9   :  { %566 = vmatmul.bf16.vlgmr.msra.gmra.mxu3 %v163_v53  ;;  %579 = vmatmul.bf16.vlgmr.msrb.gmra.mxu0 %v163_v53  ;;  %v160_v54 = vpop.f32.mrf.mxu0 }
  0xc8   :  { %592 = vmatmul.bf16.vlgmr.msrb.gmra.mxu1 %v163_v53  ;;  %605 = vmatmul.bf16.vlgmr.msrb.gmra.mxu2 %v163_v53 }
  0xc9   :  { %618 = vmatmul.bf16.vlgmr.msrb.gmra.mxu3 %v163_v53 }
 0x135   :  { %v541_v58 = vpop.f32.mrf.mxu1 }
 0x136   :  { %v542_v59 = vadd.f32 %v541_v58, %v230_v56  ;;  %v580_v60 = vpop.f32.mrf.mxu0 }
 0x137   :  { %v581_v61 = vadd.f32 %v580_v60, %v233_v57 }
 0x138   :  { %986 = vtanh.f32 %v542_v59 }
 0x139   :  { %988 = vtanh.f32 %v581_v61 }
 0x13b   :  { %v554_v0 = vpop.f32.mrf.mxu2 }
 0x13c   :  { %v555_v1 = vadd.f32 %v554_v0, %v231_v62  ;;  %v567_v2 = vpop.f32.mrf.mxu3 }
 0x13d   :  { %v568_v3 = vadd.f32 %v567_v2, %v232_v63  ;;  %v543_v4 = vpop.f32.mrf.mxu1 }
 0x13e   :  { %v987_v5 = vpop.eup %986  ;;  %990 = vtanh.f32 %v555_v1  ;;  %v582_v6 = vpop.f32.mrf.mxu0 }
 0x13f   :  { %v989_v7 = vpop.eup %988  ;;  %630 = vst [vmem:[#allocation10] sm:$0xff] %v987_v5  ;;  %992 = vtanh.f32 %v568_v3 }
 0x140   :  { %633 = vst [vmem:[#allocation10 + $0x18] sm:$0xff] %v989_v7 }
 0x143   :  { %v556_v9 = vpop.f32.mrf.mxu2 }
 0x144   :  { %v991_v10 = vpop.eup %990  ;;  %v569_v11 = vpop.f32.mrf.mxu3 }
 0x145   :  { %v993_v12 = vpop.eup %992  ;;  %631 = vst [vmem:[#allocation10 + $0x8] sm:$0xff] %v991_v10  ;;  %v593_v13 = vpop.f32.mrf.mxu1 }
 0x146   :  { %632 = vst [vmem:[#allocation10 + $0x10] sm:$0xff] %v993_v12  ;;  %v594_v14 = vadd.f32 %v593_v13, %v234_v8 }
 0x148   :  { %994 = vtanh.f32 %v594_v14 }
 0x14b   :  { %v606_v17 = vpop.f32.mrf.mxu2 }
 0x14c   :  { %v607_v18 = vadd.f32 %v606_v17, %v235_v15  ;;  %v619_v19 = vpop.f32.mrf.mxu3 }
 0x14d   :  { %v620_v20 = vadd.f32 %v619_v19, %v236_v16  ;;  %v595_v21 = vpop.f32.mrf.mxu1 }
 0x14e   :  { %v995_v22 = vpop.eup %994  ;;  %996 = vtanh.f32 %v607_v18 }
 0x14f   :  { %634 = vst [vmem:[#allocation10 + $0x20] sm:$0xff] %v995_v22  ;;  %998 = vtanh.f32 %v620_v20 }
 0x153   :  { %v608_v23 = vpop.f32.mrf.mxu2 }
 0x154   :  { %v997_v24 = vpop.eup %996  ;;  %v621_v25 = vpop.f32.mrf.mxu3 }
 0x155   :  { %v999_v26 = vpop.eup %998  ;;  %635 = vst [vmem:[#allocation10 + $0x28] sm:$0xff] %v997_v24 }
 0x156   :  { %636 = vst [vmem:[#allocation10 + $0x30] sm:$0xff] %v999_v26 }
 0x157   :  { %647 = dma.vmem_to_hbm [thread:$0]  %s643_s15, 896, %s645_s18, [#allocation4]  }
 0x158   :  { %1126 = dma.done.wait [#allocation4], 896  }
 0x159   :  { %1127 = vsyncadd [#allocation4], 4294966400 }
 0x15a   :  { %652 = vsyncpa [#allocation3], 1 }
 0x15b   :  { %653 = vsyncpa [#allocation6], 1 }
 0x15c   :  { %654 = vsyncpa [#allocation9], 1 }
 0x15d   :  { %655 = vsyncpa [#allocation4], 1 }

</bundles_post_ra>
